<compile_context>
chip_gen: v7x
topology: tpu7x:2x2x1
jax: 0.10.0
libtpu: 0.0.40
codegen_flags: <defaults>
</compile_context>

<pallas_src>
from functools import partial

import jax
import jax.numpy as jnp
from jax.experimental import pallas as pl
from jax.experimental.pallas import tpu as pltpu


def recurrent_kernel(x_ref, wx_ref, bf_ref, whh_ref, wph_ref, wpc_ref, bp_ref,
                     packed_ref):
    """Fused fc1+LSTM-input projection, serial LSTM recurrence, fc2, packed writeback.

    x_ref   : (L*B, D)  time-major flattened input (row = t*B + b)
    wx_ref  : (D, 4H)   fc1-folded input->gates weight; g-gate columns pre-scaled by 2
    bf_ref  : (1, 4H)   folded bias; g-gate columns pre-scaled by 2
    whh_ref : (H, 4H)   hidden->gates weight; g-gate columns pre-scaled by 2
    wph_ref : (H, P)    packed output projection for h:  [w2 | I_H | 0]
    wpc_ref : (H, P)    packed output projection for c:  [0  | 0   | I_H]
    bp_ref  : (1, P)    packed bias: [b2 | 0 | 0]
    packed_ref : (B, P) lane-dense output slab: [logits | h | c | pad]
    """
    LB, _ = x_ref.shape
    H = whh_ref.shape[0]
    B = packed_ref.shape[0]
    L = LB // B

    # Entire x-path as ONE MXU matmul, off the serial recurrence chain.
    xg_all = (jnp.dot(x_ref[...], wx_ref[...], preferred_element_type=jnp.float32)
              + bf_ref[...])                                   # (L*B, 4H)

    whh = whh_ref[...]                                         # resident across all steps

    # state=None in the PyTorch forward -> zero initial hidden/cell state; kept in vregs.
    h = jnp.zeros((B, H), jnp.float32)
    c = jnp.zeros((B, H), jnp.float32)

    # L is small and static -> fully unrolled straight-line recurrence.
    for t in range(L):
        g = xg_all[t * B:(t + 1) * B, :] + jnp.dot(h, whh,
                                                   preferred_element_type=jnp.float32)
        # Single full-width EUP pass.  g-gate pre-activations were pre-scaled by 2, so
        # tanh(z_g) = 2*sigmoid(2*z_g) - 1 is recovered with one VPU FMA.
        s = jax.nn.sigmoid(g)                                  # (B, 4H)
        i_g = s[:, 0 * H:1 * H]
        f_g = s[:, 1 * H:2 * H]
        g_g = 2.0 * s[:, 2 * H:3 * H] - 1.0                    # == tanh of original pre-activation
        o_g = s[:, 3 * H:4 * H]
        c = f_g * c + i_g * g_g
        h = o_g * jnp.tanh(c)

    # Lane-dense packed writeback: [fc2(h) | h | c | pad] built with two tiny MXU matmuls
    # (no lane shuffles), stored as one unmasked (B, P) vst.
    packed = (jnp.dot(h, wph_ref[...], preferred_element_type=jnp.float32)
              + jnp.dot(c, wpc_ref[...], preferred_element_type=jnp.float32)
              + bp_ref[...])
    packed_ref[...] = packed.astype(packed_ref.dtype)


def prepare_params(p):
    """One-time weight folding / packing (do NOT call per forward)."""
    H = p['w1'].shape[1]
    A = p['w2'].shape[1]

    # Fold fc1 into the LSTM input projection (exact algebra):
    #   (x@W1 + b1)@Wih + bl  ==  x@(W1@Wih) + (b1@Wih + bl)
    wx = p['w1'] @ p['wih']                                    # (D, 4H)
    bf = p['b1'] @ p['wih'] + p['bl']                          # (1, 4H)
    whh = p['whh']                                             # (H, 4H)

    # Pre-scale g-gate columns by 2 so the kernel needs only one sigmoid pass
    # (tanh(z) = 2*sigmoid(2z) - 1).  Gate order [i, f, g, o].
    scale = jnp.concatenate([jnp.ones((2 * H,), jnp.float32),
                             jnp.full((H,), 2.0, jnp.float32),
                             jnp.ones((H,), jnp.float32)])     # (4H,)
    wx = wx * scale
    bf = bf * scale
    whh = whh * scale

    # Packed, lane-dense output projection: columns [0:A]=logits, [A:A+H]=h, [A+H:A+2H]=c.
    P = 128 * max(1, -(-(A + 2 * H) // 128))                   # round up to lane width
    eye = jnp.eye(H, dtype=jnp.float32)
    wph = jnp.zeros((H, P), jnp.float32).at[:, :A].set(p['w2']).at[:, A:A + H].set(eye)
    wpc = jnp.zeros((H, P), jnp.float32).at[:, A + H:A + 2 * H].set(eye)
    bp = jnp.zeros((1, P), jnp.float32).at[:, :A].set(p['b2'])

    return {'wx': wx.astype(jnp.float32), 'bf': bf.astype(jnp.float32),
            'whh': whh.astype(jnp.float32), 'wph': wph, 'wpc': wpc, 'bp': bp}


@partial(jax.jit, static_argnums=(2,))
def recurrent_forward(x, prep, action_dim):
    """x: (B, L, D) float32 (batch_first) or (B, D).

    Returns (logits (B, A), {'h': (B, 1, H), 'c': (B, 1, H)}) matching the PyTorch return
    convention (h/c transposed to batch-first, num_layers=1, state=None path).
    """
    if x.ndim == 2:
        x = x[:, None, :]
    B, L, D = x.shape
    H = prep['whh'].shape[0]
    G = 4 * H
    A = action_dim
    P = prep['bp'].shape[1]

    # Time-major flatten so each timestep's gate rows are a contiguous static sublane slice.
    x_tm = jnp.transpose(x, (1, 0, 2)).reshape(L * B, D).astype(jnp.float32)

    vmem = pl.BlockSpec(memory_space=pltpu.MemorySpace.VMEM)
    cost = pl.CostEstimate(
        flops=2 * L * B * D * G + 2 * L * B * H * G + 4 * B * H * P,
        transcendentals=L * B * G + L * B * H,
        bytes_accessed=4 * (L * B * D + D * G + G + H * G + 2 * H * P + P + B * P),
    )

    packed = pl.pallas_call(
        recurrent_kernel,
        out_shape=jax.ShapeDtypeStruct((B, P), jnp.float32),
        in_specs=[vmem] * 7,
        out_specs=vmem,
        cost_estimate=cost,
    )(x_tm, prep['wx'], prep['bf'], prep['whh'], prep['wph'], prep['wpc'], prep['bp'])

    out = packed[:, :A]
    h = packed[:, A:A + H]
    c = packed[:, A + H:A + 2 * H]
    return out, {'h': h[:, None, :], 'c': c[:, None, :]}


def init_params(key, state_dim, action_dim, hidden_dim):
    """Deterministic synthetic parameters (PyTorch-style uniform(-1/sqrt(fan_in)) scaling)."""
    ks = jax.random.split(key, 8)
    H = hidden_dim

    def u(k, shape, fan):
        bound = 1.0 / jnp.sqrt(fan)
        return jax.random.uniform(k, shape, jnp.float32, -bound, bound)

    w1 = u(ks[0], (state_dim, H), state_dim)          # fc1.weight^T
    b1 = u(ks[1], (1, H), state_dim)                  # fc1.bias
    wih = u(ks[2], (H, 4 * H), H)                     # lstm.weight_ih_l0^T
    whh = u(ks[3], (H, 4 * H), H)                     # lstm.weight_hh_l0^T
    b_ih = u(ks[4], (1, 4 * H), H)
    b_hh = u(ks[5], (1, 4 * H), H)
    w2 = u(ks[6], (H, action_dim), H)                 # fc2.weight^T
    b2 = u(ks[7], (1, action_dim), H)
    return {'w1': w1, 'b1': b1, 'wih': wih, 'whh': whh,
            'bl': b_ih + b_hh, 'w2': w2, 'b2': b2}


def reference_forward(x, p):
    """Pure-JAX reference of the PyTorch forward (state=None path), UNFUSED math."""
    B, L, D = x.shape
    H = p['w1'].shape[1]
    xh = (x.reshape(B * L, D) @ p['w1'] + p['b1']).reshape(B, L, H)
    h = jnp.zeros((B, H), jnp.float32)
    c = jnp.zeros((B, H), jnp.float32)
    for t in range(L):
        g = xh[:, t] @ p['wih'] + h @ p['whh'] + p['bl']
        i_g = jax.nn.sigmoid(g[:, :H])
        f_g = jax.nn.sigmoid(g[:, H:2 * H])
        g_g = jnp.tanh(g[:, 2 * H:3 * H])
        o_g = jax.nn.sigmoid(g[:, 3 * H:])
        c = f_g * c + i_g * g_g
        h = o_g * jnp.tanh(c)
    out = h @ p['w2'] + p['b2']
    return out, h, c


if __name__ == "__main__":
    B, L = 2, 8                 # batch, sequence length
    state_dim, hidden_dim, action_dim = 4, 32, 4

    key = jax.random.PRNGKey(0)
    k_x, k_p = jax.random.split(key)
    x = jax.random.normal(k_x, (B, L, state_dim), jnp.float32)
    params = init_params(k_p, state_dim, action_dim, hidden_dim)
    prep = prepare_params(params)          # one-time weight folding / packing

    out, state = recurrent_forward(x, prep, action_dim)
    out = jax.block_until_ready(out)
    h = jax.block_until_ready(state['h'])
    c = jax.block_until_ready(state['c'])

    ref_out, ref_h, ref_c = reference_forward(x, params)
    assert out.shape == (B, action_dim)
    assert h.shape == (B, 1, hidden_dim) and c.shape == (B, 1, hidden_dim)
    assert jnp.allclose(out, ref_out, rtol=5e-3, atol=5e-3)
    assert jnp.allclose(h[:, 0], ref_h, rtol=5e-3, atol=5e-3)
    assert jnp.allclose(c[:, 0], ref_c, rtol=5e-3, atol=5e-3)

    print("KERNEL_OK")
</pallas_src>

<mosaic_0001>
module attributes {stable_mosaic.version = 11 : i64} {
  func.func @recurrent_kernel(%arg0: memref<16x4xf32, #tpu.memory_space<vmem>>, %arg1: memref<4x128xf32, #tpu.memory_space<vmem>>, %arg2: memref<1x128xf32, #tpu.memory_space<vmem>>, %arg3: memref<32x128xf32, #tpu.memory_space<vmem>>, %arg4: memref<32x128xf32, #tpu.memory_space<vmem>>, %arg5: memref<32x128xf32, #tpu.memory_space<vmem>>, %arg6: memref<1x128xf32, #tpu.memory_space<vmem>>, %arg7: memref<2x128xf32, #tpu.memory_space<vmem>>) attributes {dimension_semantics = [], scalar_prefetch = 0 : i64, scratch_operands = 0 : i64, tpu.core_type = #tpu.core_type<tc>} {
    %c0 = arith.constant 0 : index
    %c0_0 = arith.constant 0 : index
    %0 = vector.load %arg0[%c0, %c0_0] : memref<16x4xf32, #tpu.memory_space<vmem>>, vector<16x4xf32>
    %c0_1 = arith.constant 0 : index
    %c0_2 = arith.constant 0 : index
    %1 = vector.load %arg1[%c0_1, %c0_2] : memref<4x128xf32, #tpu.memory_space<vmem>>, vector<4x128xf32>
    %cst = arith.constant dense<0.000000e+00> : vector<16x128xf32>
    %2 = tpu.matmul %0, %1, %cst {dimension_numbers = #tpu.dot_dimension_numbers<[1], [0], [0], [1], [0, 0, 1, 1], [], []>} : vector<16x4xf32>, vector<4x128xf32>, vector<16x128xf32> -> vector<16x128xf32>
    %c0_3 = arith.constant 0 : index
    %c0_4 = arith.constant 0 : index
    %3 = vector.load %arg2[%c0_3, %c0_4] : memref<1x128xf32, #tpu.memory_space<vmem>>, vector<1x128xf32>
    %4 = vector.broadcast %3 : vector<1x128xf32> to vector<16x128xf32>
    %5 = arith.addf %2, %4 : vector<16x128xf32>
    %c0_5 = arith.constant 0 : index
    %c0_6 = arith.constant 0 : index
    %6 = vector.load %arg3[%c0_5, %c0_6] : memref<32x128xf32, #tpu.memory_space<vmem>>, vector<32x128xf32>
    %cst_7 = arith.constant 0.000000e+00 : f32
    %7 = vector.broadcast %cst_7 : f32 to vector<2x32xf32>
    %cst_8 = arith.constant 0.000000e+00 : f32
    %8 = vector.broadcast %cst_8 : f32 to vector<2x32xf32>
    %9 = vector.extract_strided_slice %5 {offsets = [0, 0], sizes = [2, 128], strides = [1, 1]} : vector<16x128xf32> to vector<2x128xf32>
    %cst_9 = arith.constant dense<0.000000e+00> : vector<2x128xf32>
    %10 = tpu.matmul %7, %6, %cst_9 {dimension_numbers = #tpu.dot_dimension_numbers<[1], [0], [0], [1], [0, 0, 1, 1], [], []>} : vector<2x32xf32>, vector<32x128xf32>, vector<2x128xf32> -> vector<2x128xf32>
    %11 = arith.addf %9, %10 : vector<2x128xf32>
    %12 = arith.negf %11 : vector<2x128xf32>
    %13 = math.exp %12 : vector<2x128xf32>
    %cst_10 = arith.constant 1.000000e+00 : f32
    %14 = vector.broadcast %cst_10 : f32 to vector<2x128xf32>
    %15 = arith.addf %14, %13 : vector<2x128xf32>
    %16 = arith.divf %14, %15 : vector<2x128xf32>
    %17 = vector.extract_strided_slice %16 {offsets = [0, 0], sizes = [2, 32], strides = [1, 1]} : vector<2x128xf32> to vector<2x32xf32>
    %18 = vector.extract_strided_slice %16 {offsets = [0, 32], sizes = [2, 32], strides = [1, 1]} : vector<2x128xf32> to vector<2x32xf32>
    %19 = vector.extract_strided_slice %16 {offsets = [0, 64], sizes = [2, 32], strides = [1, 1]} : vector<2x128xf32> to vector<2x32xf32>
    %cst_11 = arith.constant 2.000000e+00 : f32
    %20 = vector.broadcast %cst_11 : f32 to vector<2x32xf32>
    %21 = arith.mulf %20, %19 : vector<2x32xf32>
    %cst_12 = arith.constant 1.000000e+00 : f32
    %22 = vector.broadcast %cst_12 : f32 to vector<2x32xf32>
    %23 = arith.subf %21, %22 : vector<2x32xf32>
    %24 = vector.extract_strided_slice %16 {offsets = [0, 96], sizes = [2, 32], strides = [1, 1]} : vector<2x128xf32> to vector<2x32xf32>
    %25 = arith.mulf %18, %8 : vector<2x32xf32>
    %26 = arith.mulf %17, %23 : vector<2x32xf32>
    %27 = arith.addf %25, %26 : vector<2x32xf32>
    %28 = math.tanh %27 : vector<2x32xf32>
    %29 = arith.mulf %24, %28 : vector<2x32xf32>
    %30 = vector.extract_strided_slice %5 {offsets = [2, 0], sizes = [2, 128], strides = [1, 1]} : vector<16x128xf32> to vector<2x128xf32>
    %cst_13 = arith.constant dense<0.000000e+00> : vector<2x128xf32>
    %31 = tpu.matmul %29, %6, %cst_13 {dimension_numbers = #tpu.dot_dimension_numbers<[1], [0], [0], [1], [0, 0, 1, 1], [], []>} : vector<2x32xf32>, vector<32x128xf32>, vector<2x128xf32> -> vector<2x128xf32>
    %32 = arith.addf %30, %31 : vector<2x128xf32>
    %33 = arith.negf %32 : vector<2x128xf32>
    %34 = math.exp %33 : vector<2x128xf32>
    %cst_14 = arith.constant 1.000000e+00 : f32
    %35 = vector.broadcast %cst_14 : f32 to vector<2x128xf32>
    %36 = arith.addf %35, %34 : vector<2x128xf32>
    %37 = arith.divf %35, %36 : vector<2x128xf32>
    %38 = vector.extract_strided_slice %37 {offsets = [0, 0], sizes = [2, 32], strides = [1, 1]} : vector<2x128xf32> to vector<2x32xf32>
    %39 = vector.extract_strided_slice %37 {offsets = [0, 32], sizes = [2, 32], strides = [1, 1]} : vector<2x128xf32> to vector<2x32xf32>
    %40 = vector.extract_strided_slice %37 {offsets = [0, 64], sizes = [2, 32], strides = [1, 1]} : vector<2x128xf32> to vector<2x32xf32>
    %cst_15 = arith.constant 2.000000e+00 : f32
    %41 = vector.broadcast %cst_15 : f32 to vector<2x32xf32>
    %42 = arith.mulf %41, %40 : vector<2x32xf32>
    %cst_16 = arith.constant 1.000000e+00 : f32
    %43 = vector.broadcast %cst_16 : f32 to vector<2x32xf32>
    %44 = arith.subf %42, %43 : vector<2x32xf32>
    %45 = vector.extract_strided_slice %37 {offsets = [0, 96], sizes = [2, 32], strides = [1, 1]} : vector<2x128xf32> to vector<2x32xf32>
    %46 = arith.mulf %39, %27 : vector<2x32xf32>
    %47 = arith.mulf %38, %44 : vector<2x32xf32>
    %48 = arith.addf %46, %47 : vector<2x32xf32>
    %49 = math.tanh %48 : vector<2x32xf32>
    %50 = arith.mulf %45, %49 : vector<2x32xf32>
    %51 = vector.extract_strided_slice %5 {offsets = [4, 0], sizes = [2, 128], strides = [1, 1]} : vector<16x128xf32> to vector<2x128xf32>
    %cst_17 = arith.constant dense<0.000000e+00> : vector<2x128xf32>
    %52 = tpu.matmul %50, %6, %cst_17 {dimension_numbers = #tpu.dot_dimension_numbers<[1], [0], [0], [1], [0, 0, 1, 1], [], []>} : vector<2x32xf32>, vector<32x128xf32>, vector<2x128xf32> -> vector<2x128xf32>
    %53 = arith.addf %51, %52 : vector<2x128xf32>
    %54 = arith.negf %53 : vector<2x128xf32>
    %55 = math.exp %54 : vector<2x128xf32>
    %cst_18 = arith.constant 1.000000e+00 : f32
    %56 = vector.broadcast %cst_18 : f32 to vector<2x128xf32>
    %57 = arith.addf %56, %55 : vector<2x128xf32>
    %58 = arith.divf %56, %57 : vector<2x128xf32>
    %59 = vector.extract_strided_slice %58 {offsets = [0, 0], sizes = [2, 32], strides = [1, 1]} : vector<2x128xf32> to vector<2x32xf32>
    %60 = vector.extract_strided_slice %58 {offsets = [0, 32], sizes = [2, 32], strides = [1, 1]} : vector<2x128xf32> to vector<2x32xf32>
    %61 = vector.extract_strided_slice %58 {offsets = [0, 64], sizes = [2, 32], strides = [1, 1]} : vector<2x128xf32> to vector<2x32xf32>
    %cst_19 = arith.constant 2.000000e+00 : f32
    %62 = vector.broadcast %cst_19 : f32 to vector<2x32xf32>
    %63 = arith.mulf %62, %61 : vector<2x32xf32>
    %cst_20 = arith.constant 1.000000e+00 : f32
    %64 = vector.broadcast %cst_20 : f32 to vector<2x32xf32>
    %65 = arith.subf %63, %64 : vector<2x32xf32>
    %66 = vector.extract_strided_slice %58 {offsets = [0, 96], sizes = [2, 32], strides = [1, 1]} : vector<2x128xf32> to vector<2x32xf32>
    %67 = arith.mulf %60, %48 : vector<2x32xf32>
    %68 = arith.mulf %59, %65 : vector<2x32xf32>
    %69 = arith.addf %67, %68 : vector<2x32xf32>
    %70 = math.tanh %69 : vector<2x32xf32>
    %71 = arith.mulf %66, %70 : vector<2x32xf32>
    %72 = vector.extract_strided_slice %5 {offsets = [6, 0], sizes = [2, 128], strides = [1, 1]} : vector<16x128xf32> to vector<2x128xf32>
    %cst_21 = arith.constant dense<0.000000e+00> : vector<2x128xf32>
    %73 = tpu.matmul %71, %6, %cst_21 {dimension_numbers = #tpu.dot_dimension_numbers<[1], [0], [0], [1], [0, 0, 1, 1], [], []>} : vector<2x32xf32>, vector<32x128xf32>, vector<2x128xf32> -> vector<2x128xf32>
    %74 = arith.addf %72, %73 : vector<2x128xf32>
    %75 = arith.negf %74 : vector<2x128xf32>
    %76 = math.exp %75 : vector<2x128xf32>
    %cst_22 = arith.constant 1.000000e+00 : f32
    %77 = vector.broadcast %cst_22 : f32 to vector<2x128xf32>
    %78 = arith.addf %77, %76 : vector<2x128xf32>
    %79 = arith.divf %77, %78 : vector<2x128xf32>
    %80 = vector.extract_strided_slice %79 {offsets = [0, 0], sizes = [2, 32], strides = [1, 1]} : vector<2x128xf32> to vector<2x32xf32>
    %81 = vector.extract_strided_slice %79 {offsets = [0, 32], sizes = [2, 32], strides = [1, 1]} : vector<2x128xf32> to vector<2x32xf32>
    %82 = vector.extract_strided_slice %79 {offsets = [0, 64], sizes = [2, 32], strides = [1, 1]} : vector<2x128xf32> to vector<2x32xf32>
    %cst_23 = arith.constant 2.000000e+00 : f32
    %83 = vector.broadcast %cst_23 : f32 to vector<2x32xf32>
    %84 = arith.mulf %83, %82 : vector<2x32xf32>
    %cst_24 = arith.constant 1.000000e+00 : f32
    %85 = vector.broadcast %cst_24 : f32 to vector<2x32xf32>
    %86 = arith.subf %84, %85 : vector<2x32xf32>
    %87 = vector.extract_strided_slice %79 {offsets = [0, 96], sizes = [2, 32], strides = [1, 1]} : vector<2x128xf32> to vector<2x32xf32>
    %88 = arith.mulf %81, %69 : vector<2x32xf32>
    %89 = arith.mulf %80, %86 : vector<2x32xf32>
    %90 = arith.addf %88, %89 : vector<2x32xf32>
    %91 = math.tanh %90 : vector<2x32xf32>
    %92 = arith.mulf %87, %91 : vector<2x32xf32>
    %93 = vector.extract_strided_slice %5 {offsets = [8, 0], sizes = [2, 128], strides = [1, 1]} : vector<16x128xf32> to vector<2x128xf32>
    %cst_25 = arith.constant dense<0.000000e+00> : vector<2x128xf32>
    %94 = tpu.matmul %92, %6, %cst_25 {dimension_numbers = #tpu.dot_dimension_numbers<[1], [0], [0], [1], [0, 0, 1, 1], [], []>} : vector<2x32xf32>, vector<32x128xf32>, vector<2x128xf32> -> vector<2x128xf32>
    %95 = arith.addf %93, %94 : vector<2x128xf32>
    %96 = arith.negf %95 : vector<2x128xf32>
    %97 = math.exp %96 : vector<2x128xf32>
    %cst_26 = arith.constant 1.000000e+00 : f32
    %98 = vector.broadcast %cst_26 : f32 to vector<2x128xf32>
    %99 = arith.addf %98, %97 : vector<2x128xf32>
    %100 = arith.divf %98, %99 : vector<2x128xf32>
    %101 = vector.extract_strided_slice %100 {offsets = [0, 0], sizes = [2, 32], strides = [1, 1]} : vector<2x128xf32> to vector<2x32xf32>
    %102 = vector.extract_strided_slice %100 {offsets = [0, 32], sizes = [2, 32], strides = [1, 1]} : vector<2x128xf32> to vector<2x32xf32>
    %103 = vector.extract_strided_slice %100 {offsets = [0, 64], sizes = [2, 32], strides = [1, 1]} : vector<2x128xf32> to vector<2x32xf32>
    %cst_27 = arith.constant 2.000000e+00 : f32
    %104 = vector.broadcast %cst_27 : f32 to vector<2x32xf32>
    %105 = arith.mulf %104, %103 : vector<2x32xf32>
    %cst_28 = arith.constant 1.000000e+00 : f32
    %106 = vector.broadcast %cst_28 : f32 to vector<2x32xf32>
    %107 = arith.subf %105, %106 : vector<2x32xf32>
    %108 = vector.extract_strided_slice %100 {offsets = [0, 96], sizes = [2, 32], strides = [1, 1]} : vector<2x128xf32> to vector<2x32xf32>
    %109 = arith.mulf %102, %90 : vector<2x32xf32>
    %110 = arith.mulf %101, %107 : vector<2x32xf32>
    %111 = arith.addf %109, %110 : vector<2x32xf32>
    %112 = math.tanh %111 : vector<2x32xf32>
    %113 = arith.mulf %108, %112 : vector<2x32xf32>
    %114 = vector.extract_strided_slice %5 {offsets = [10, 0], sizes = [2, 128], strides = [1, 1]} : vector<16x128xf32> to vector<2x128xf32>
    %cst_29 = arith.constant dense<0.000000e+00> : vector<2x128xf32>
    %115 = tpu.matmul %113, %6, %cst_29 {dimension_numbers = #tpu.dot_dimension_numbers<[1], [0], [0], [1], [0, 0, 1, 1], [], []>} : vector<2x32xf32>, vector<32x128xf32>, vector<2x128xf32> -> vector<2x128xf32>
    %116 = arith.addf %114, %115 : vector<2x128xf32>
    %117 = arith.negf %116 : vector<2x128xf32>
    %118 = math.exp %117 : vector<2x128xf32>
    %cst_30 = arith.constant 1.000000e+00 : f32
    %119 = vector.broadcast %cst_30 : f32 to vector<2x128xf32>
    %120 = arith.addf %119, %118 : vector<2x128xf32>
    %121 = arith.divf %119, %120 : vector<2x128xf32>
    %122 = vector.extract_strided_slice %121 {offsets = [0, 0], sizes = [2, 32], strides = [1, 1]} : vector<2x128xf32> to vector<2x32xf32>
    %123 = vector.extract_strided_slice %121 {offsets = [0, 32], sizes = [2, 32], strides = [1, 1]} : vector<2x128xf32> to vector<2x32xf32>
    %124 = vector.extract_strided_slice %121 {offsets = [0, 64], sizes = [2, 32], strides = [1, 1]} : vector<2x128xf32> to vector<2x32xf32>
    %cst_31 = arith.constant 2.000000e+00 : f32
    %125 = vector.broadcast %cst_31 : f32 to vector<2x32xf32>
    %126 = arith.mulf %125, %124 : vector<2x32xf32>
    %cst_32 = arith.constant 1.000000e+00 : f32
    %127 = vector.broadcast %cst_32 : f32 to vector<2x32xf32>
    %128 = arith.subf %126, %127 : vector<2x32xf32>
    %129 = vector.extract_strided_slice %121 {offsets = [0, 96], sizes = [2, 32], strides = [1, 1]} : vector<2x128xf32> to vector<2x32xf32>
    %130 = arith.mulf %123, %111 : vector<2x32xf32>
    %131 = arith.mulf %122, %128 : vector<2x32xf32>
    %132 = arith.addf %130, %131 : vector<2x32xf32>
    %133 = math.tanh %132 : vector<2x32xf32>
    %134 = arith.mulf %129, %133 : vector<2x32xf32>
    %135 = vector.extract_strided_slice %5 {offsets = [12, 0], sizes = [2, 128], strides = [1, 1]} : vector<16x128xf32> to vector<2x128xf32>
    %cst_33 = arith.constant dense<0.000000e+00> : vector<2x128xf32>
    %136 = tpu.matmul %134, %6, %cst_33 {dimension_numbers = #tpu.dot_dimension_numbers<[1], [0], [0], [1], [0, 0, 1, 1], [], []>} : vector<2x32xf32>, vector<32x128xf32>, vector<2x128xf32> -> vector<2x128xf32>
    %137 = arith.addf %135, %136 : vector<2x128xf32>
    %138 = arith.negf %137 : vector<2x128xf32>
    %139 = math.exp %138 : vector<2x128xf32>
    %cst_34 = arith.constant 1.000000e+00 : f32
    %140 = vector.broadcast %cst_34 : f32 to vector<2x128xf32>
    %141 = arith.addf %140, %139 : vector<2x128xf32>
    %142 = arith.divf %140, %141 : vector<2x128xf32>
    %143 = vector.extract_strided_slice %142 {offsets = [0, 0], sizes = [2, 32], strides = [1, 1]} : vector<2x128xf32> to vector<2x32xf32>
    %144 = vector.extract_strided_slice %142 {offsets = [0, 32], sizes = [2, 32], strides = [1, 1]} : vector<2x128xf32> to vector<2x32xf32>
    %145 = vector.extract_strided_slice %142 {offsets = [0, 64], sizes = [2, 32], strides = [1, 1]} : vector<2x128xf32> to vector<2x32xf32>
    %cst_35 = arith.constant 2.000000e+00 : f32
    %146 = vector.broadcast %cst_35 : f32 to vector<2x32xf32>
    %147 = arith.mulf %146, %145 : vector<2x32xf32>
    %cst_36 = arith.constant 1.000000e+00 : f32
    %148 = vector.broadcast %cst_36 : f32 to vector<2x32xf32>
    %149 = arith.subf %147, %148 : vector<2x32xf32>
    %150 = vector.extract_strided_slice %142 {offsets = [0, 96], sizes = [2, 32], strides = [1, 1]} : vector<2x128xf32> to vector<2x32xf32>
    %151 = arith.mulf %144, %132 : vector<2x32xf32>
    %152 = arith.mulf %143, %149 : vector<2x32xf32>
    %153 = arith.addf %151, %152 : vector<2x32xf32>
    %154 = math.tanh %153 : vector<2x32xf32>
    %155 = arith.mulf %150, %154 : vector<2x32xf32>
    %156 = vector.extract_strided_slice %5 {offsets = [14, 0], sizes = [2, 128], strides = [1, 1]} : vector<16x128xf32> to vector<2x128xf32>
    %cst_37 = arith.constant dense<0.000000e+00> : vector<2x128xf32>
    %157 = tpu.matmul %155, %6, %cst_37 {dimension_numbers = #tpu.dot_dimension_numbers<[1], [0], [0], [1], [0, 0, 1, 1], [], []>} : vector<2x32xf32>, vector<32x128xf32>, vector<2x128xf32> -> vector<2x128xf32>
    %158 = arith.addf %156, %157 : vector<2x128xf32>
    %159 = arith.negf %158 : vector<2x128xf32>
    %160 = math.exp %159 : vector<2x128xf32>
    %cst_38 = arith.constant 1.000000e+00 : f32
    %161 = vector.broadcast %cst_38 : f32 to vector<2x128xf32>
    %162 = arith.addf %161, %160 : vector<2x128xf32>
    %163 = arith.divf %161, %162 : vector<2x128xf32>
    %164 = vector.extract_strided_slice %163 {offsets = [0, 0], sizes = [2, 32], strides = [1, 1]} : vector<2x128xf32> to vector<2x32xf32>
    %165 = vector.extract_strided_slice %163 {offsets = [0, 32], sizes = [2, 32], strides = [1, 1]} : vector<2x128xf32> to vector<2x32xf32>
    %166 = vector.extract_strided_slice %163 {offsets = [0, 64], sizes = [2, 32], strides = [1, 1]} : vector<2x128xf32> to vector<2x32xf32>
    %cst_39 = arith.constant 2.000000e+00 : f32
    %167 = vector.broadcast %cst_39 : f32 to vector<2x32xf32>
    %168 = arith.mulf %167, %166 : vector<2x32xf32>
    %cst_40 = arith.constant 1.000000e+00 : f32
    %169 = vector.broadcast %cst_40 : f32 to vector<2x32xf32>
    %170 = arith.subf %168, %169 : vector<2x32xf32>
    %171 = vector.extract_strided_slice %163 {offsets = [0, 96], sizes = [2, 32], strides = [1, 1]} : vector<2x128xf32> to vector<2x32xf32>
    %172 = arith.mulf %165, %153 : vector<2x32xf32>
    %173 = arith.mulf %164, %170 : vector<2x32xf32>
    %174 = arith.addf %172, %173 : vector<2x32xf32>
    %175 = math.tanh %174 : vector<2x32xf32>
    %176 = arith.mulf %171, %175 : vector<2x32xf32>
    %c0_41 = arith.constant 0 : index
    %c0_42 = arith.constant 0 : index
    %177 = vector.load %arg4[%c0_41, %c0_42] : memref<32x128xf32, #tpu.memory_space<vmem>>, vector<32x128xf32>
    %cst_43 = arith.constant dense<0.000000e+00> : vector<2x128xf32>
    %178 = tpu.matmul %176, %177, %cst_43 {dimension_numbers = #tpu.dot_dimension_numbers<[1], [0], [0], [1], [0, 0, 1, 1], [], []>} : vector<2x32xf32>, vector<32x128xf32>, vector<2x128xf32> -> vector<2x128xf32>
    %c0_44 = arith.constant 0 : index
    %c0_45 = arith.constant 0 : index
    %179 = vector.load %arg5[%c0_44, %c0_45] : memref<32x128xf32, #tpu.memory_space<vmem>>, vector<32x128xf32>
    %cst_46 = arith.constant dense<0.000000e+00> : vector<2x128xf32>
    %180 = tpu.matmul %174, %179, %cst_46 {dimension_numbers = #tpu.dot_dimension_numbers<[1], [0], [0], [1], [0, 0, 1, 1], [], []>} : vector<2x32xf32>, vector<32x128xf32>, vector<2x128xf32> -> vector<2x128xf32>
    %181 = arith.addf %178, %180 : vector<2x128xf32>
    %c0_47 = arith.constant 0 : index
    %c0_48 = arith.constant 0 : index
    %182 = vector.load %arg6[%c0_47, %c0_48] : memref<1x128xf32, #tpu.memory_space<vmem>>, vector<1x128xf32>
    %183 = vector.broadcast %182 : vector<1x128xf32> to vector<2x128xf32>
    %184 = arith.addf %181, %183 : vector<2x128xf32>
    %c0_49 = arith.constant 0 : index
    %c0_50 = arith.constant 0 : index
    %185 = vector.load %arg7[%c0_49, %c0_50] : memref<2x128xf32, #tpu.memory_space<vmem>>, vector<2x128xf32>
    tpu.vector_store %arg7[%c0_49, %c0_50], %184 {strides = array<i32>} : memref<2x128xf32, #tpu.memory_space<vmem>>, vector<2x128xf32>,
    return
  }
}

</mosaic_0001>

<bundles_post_ra>
// kernel: recurrent_forward.1
= control target key start
LH: loop header
LB: loop body
LE: loop exit
PB: predicated region body
PF: predicated region fallthrough
CT: control target
= control target key end

     0   :  { %12 = vsyncpa [#allocation3], 0  ;;  %s1762_s0 = inlined_call_operand.vmem [shape: f32[16,4], index: 0, kind: input, shape index: {}]   ;;  %s1763_s1 = inlined_call_operand.vmem [shape: f32[4,128], index: 1, kind: input, shape index: {}]   ;;  %s1764_s2 = inlined_call_operand.vmem [shape: f32[1,128], index: 2, kind: input, shape index: {}]   ;;  %s1765_s3 = inlined_call_operand.vmem [shape: f32[32,128], index: 3, kind: input, shape index: {}]   ;;  %s1766_s4 = inlined_call_operand.hbm [shape: f32[32,128], index: 4, kind: input, shape index: {}]   ;;  %s1767_s5 = inlined_call_operand.hbm [shape: f32[32,128], index: 5, kind: input, shape index: {}]   ;;  %s1768_s6 = inlined_call_operand.vmem [shape: f32[1,128], index: 6, kind: input, shape index: {}]   ;;  %s1769_s7 = inlined_call_operand.vmem [shape: f32[2,128], index: 7, kind: output, shape index: {}]  }
   0x1   :  { %13 = vsyncpa [#allocation5], 0  ;;  %s1544_s24 = smov [#allocation2]   ;;  %s1496_s28 = scalar_lea.hbm %s1766_s4, 512 }
   0x2   :  { %s27_s25 = sshll.u32 %s1544_s24, 4  ;;  %p1497_p0 = scmp.ne.s32.totalorder %s1766_s4, %s1496_s28  ;;  %s28_s25 = int_to_ptr.vmem [resolvable:$true] %s27_s25 }
   0x3   :  { %p1500_p1 = scmp.lt.u32.totalorder %s1496_s28, %s1766_s4 }
   0x5   :  { %p1502_p2 = pnand %p1500_p1, %p1497_p0 }
   0x7   :  { %1505 = shalt.err (!%p1502_p2)
}
   0x8   :  { %s1506_s10 = scalar_lea.vmem %s28_s25, 512  ;;  %p1511_p4 = scmp.lt.s32.totalorder %s28_s25, %s28_s25 }
   0x9   :  { %p1507_p3 = scmp.ne.s32.totalorder %s28_s25, %s1506_s10  ;;  %p1512_p5 = scmp.lt.s32.totalorder %s1506_s10, %s1506_s10 }
   0xb   :  { %p1513_p6 = por %p1512_p5, %p1511_p4 }
   0xd   :  { %p1514_p7 = pnand %p1513_p6, %p1507_p3 }
   0xf   :  { %1517 = shalt.err (!%p1514_p7)
}
  0x10   :  { %s1545_s11 = smov 128   ;;  %s1546_s12 = smov 8  }
  0x11   :  { %33 = dma.hbm_to_vmem [thread:$0]  %s1766_s4, 512, %s28_s25, [#allocation3], %s1545_s11, %s1545_s11, %s1546_s12  }
  0x12   :  { %s1547_s15 = smov [#allocation4]   ;;  %s1518_s19 = scalar_lea.hbm %s1767_s5, 512 }
  0x13   :  { %s39_s16 = sshll.u32 %s1547_s15, 4  ;;  %p1519_p8 = scmp.ne.s32.totalorder %s1767_s5, %s1518_s19  ;;  %s40_s16 = int_to_ptr.vmem [resolvable:$true] %s39_s16 }
  0x14   :  { %p1522_p9 = scmp.lt.u32.totalorder %s1518_s19, %s1767_s5 }
  0x16   :  { %p1524_p10 = pnand %p1522_p9, %p1519_p8 }
  0x18   :  { %1527 = shalt.err (!%p1524_p10)
}
  0x19   :  { %s1528_s24 = scalar_lea.vmem %s40_s16, 512  ;;  %p1533_p12 = scmp.lt.s32.totalorder %s40_s16, %s40_s16 }
  0x1a   :  { %p1529_p11 = scmp.ne.s32.totalorder %s40_s16, %s1528_s24  ;;  %p1534_p13 = scmp.lt.s32.totalorder %s1528_s24, %s1528_s24 }
  0x1c   :  { %p1535_p0 = por %p1534_p13, %p1533_p12 }
  0x1e   :  { %p1536_p1 = pnand %p1535_p0, %p1529_p11 }
  0x20   :  { %1539 = shalt.err (!%p1536_p1)
}
  0x21   :  { %45 = dma.hbm_to_vmem [thread:$0]  %s1767_s5, 512, %s40_s16, [#allocation5], %s1545_s11, %s1545_s11, %s1546_s12  }
  0x22   :  { %1540 = dma.done.wait [#allocation3], 512  }
  0x23   :  { %1541 = vsyncadd [#allocation3], 4294966784 }
  0x24   :  { %1542 = dma.done.wait [#allocation5], 512  }
  0x25   :  { %1543 = vsyncadd [#allocation5], 4294966784  ;;  %v1548_v0 = vmov 0.0|0.0   ;;  %vm1549_vm0 = vmmov 0   ;;  %v1550_v1 = vmov 0.0   ;;  %vm71_vm1 = vcmask 1043456  }
  0x26   :  { %1378 = vmatprep.subr.bf16.mxu1 %v1548_v0  ;;  %1276 = vmatprep.mubr.msk.f32.mxu1 %vm1549_vm0, %v1550_v1  ;;  %vm64_vm2 = vcmask 31744   ;;  %v150_v2 = vld [vmem:[%s1765_s3] sm:$0xff]  ;;  %v151_v3 = vld [vmem:[%s1765_s3 + $0x8] sm:$0xff]  ;;  %v152_v8 = vld [vmem:[%s1765_s3 + $0x10] sm:$0xff]  ;;  %vm154_vm3 = vcmask 261120   ;;  %s1553_s16 = smov 96  }
  0x27   :  { %v56_v4 = vld [vmem:[%s1763_s1] sm:$0xf]  ;;  %v1630_v5 = vpack.c.bf16 %v151_v3, %v150_v2  ;;  %v55_v7 = vld [vmem:[%s1762_s0 + $0x8] sm:$0xff]  ;;  %v153_v9 = vld [vmem:[%s1765_s3 + $0x18] sm:$0xff]  ;;  %s1551_s3 = smov 64  }
  0x28   :  { %1263 = vmatprep.subr.msk.mxu0 %vm71_vm1, %v56_v4  ;;  %v54_v6 = vld [vmem:[%s1762_s0] sm:$0xff]  ;;  %v1645_v10 = vpack.c.bf16 %v153_v9, %v152_v8 }
  0x29   :  { %1264 = vmatpush3.msk.msra.mxu0 %vm71_vm1, %v56_v4  ;;  %1265 = vmatprep.mubr.msk.f32.mxu0 %vm64_vm2, %v54_v6  ;;  %v1180_v11 = vld [vmem:[%s1764_s2] ss:$0 sm:$0xff]  ;;  %s1552_s2 = smov 32  }
  0x2a   :  { %1380 = vmatpush3.bf16.msra.mxu1 %v1630_v5  ;;  %1266 = vmatmul.mubr.msk.f32.vlgmr.msra.gmra.mrb[0].mxu0 %vm64_vm2, %v55_v7 }
  0x2b   :  { %1381 = vmatprep.subr.bf16.mxu1 %v1548_v0  ;;  %1384 = vmatprep.subr.bf16.mxu0 %v1548_v0 }
  0x2c   :  { %1386 = vmatpush3.bf16.msra.mxu0 %v1630_v5  ;;  %1287 = vmatprep.mubr.msk.f32.mxu0 %vm1549_vm0, %v1550_v1 }
  0x2d   :  { %1387 = vmatprep.subr.bf16.mxu0 %v1548_v0 }
  0x2e   :  { %1383 = vmatpush3.bf16.msra.mxu1 %v1645_v10 }
  0x2f   :  { %1390 = vmatprep.subr.bf16.mxu1 %v1548_v0 }
  0x30   :  { %1389 = vmatpush3.bf16.msra.mxu0 %v1645_v10 }
  0x31   :  { %1277 = vmatmul.mubr.f32.vlgmr.msra.gmra.mrb[0].mxu1 %v1550_v1  ;;  %1396 = vmatprep.subr.bf16.mxu0 %v1548_v0 }
  0x32   :  { %1392 = vmatpush3.bf16.msra.mxu1 %v1630_v5  ;;  %1298 = vmatprep.mubr.msk.f32.mxu1 %vm1549_vm0, %v1550_v1 }
  0x33   :  { %1393 = vmatprep.subr.bf16.mxu1 %v1548_v0 }
  0x36   :  { %1395 = vmatpush3.bf16.msra.mxu1 %v1645_v10 }
  0x37   :  { %1402 = vmatprep.subr.bf16.mxu1 %v1548_v0 }
  0xfd   :  { %v1267_v12 = vpop.f32.mrb[0].mxu0 }
  0xfe   :  { %v1667_v13 = vadd.f32 %v1267_v12, %v1180_v11  ;;  %v141_v14 = vpop.f32.mrb[1].mxu0 }
  0xff   :  { %v1669_v15 = vadd.f32 %v1180_v11, %v141_v14 }
 0x104   :  { %v224_v16 = vpop.f32.mrb[0].mxu1 }
 0x105   :  { %v228_v17 = vadd.f32 %v224_v16, %v1669_v15  ;;  %v1278_v18 = vpop.f32.mrb[1].mxu1 }
 0x107   :  { %v1184_v19 = vmul.f32 -1.442695, %v228_v17 }
 0x109   :  { %1448 = vpow2.f32 %v1184_v19 }
 0x113   :  { %v1449_v20 = vpop.eup %1448 }
 0x114   :  { %v232_v21 = vadd.f32 1.0, %v1449_v20 }
 0x116   :  { %1450 = vrcp.f32 %v232_v21 }
 0x120   :  { %v1451_v22 = vpop.eup %1450 }
 0x121   :  { %v235_v23 = vmul.f32 2.0, %v1451_v22  ;;  %v237_v27 = vmul.f32 0.0, %v1451_v22 }
 0x123   :  { %v1185_v24 = vadd.f32 -1.0, %v235_v23 }
 0x125   :  { %239 = vrot.lane.b32.xlu0 %v1185_v24, %s1551_s3 }
 0x197   :  { %v240_v25 = vpop.permute.xlu0 %239 }
 0x198   :  { %v242_v26 = vmul.f32 %v1451_v22, %v240_v25 }
 0x19a   :  { %244 = vrot.lane.b32.xlu0 %v242_v26, %s1552_s2 }
 0x20c   :  { %v245_v28 = vpop.permute.xlu0 %244 }
 0x20d   :  { %v247_v29 = vadd.f32 %v245_v28, %v237_v27 }
 0x20f   :  { %1452 = vtanh.f32 %v247_v29  ;;  %v342_v46 = vrot.slane %v247_v29, 6 }
 0x219   :  { %v1453_v30 = vpop.eup %1452 }
 0x21a   :  { %250 = vrot.lane.b32.xlu1 %v1453_v30, %s1551_s3 }
 0x28c   :  { %v251_v31 = vpop.permute.xlu1 %250 }
 0x28d   :  { %v253_v32 = vmul.f32 %v1451_v22, %v251_v31 }
 0x28f   :  { %255 = vrot.lane.b32.xlu1 %v253_v32, %s1552_s2 }
 0x301   :  { %v256_v33 = vpop.permute.xlu1 %255 }
 0x302   :  { %1288 = vmatmul.mubr.msk.f32.vlgmr.msra.gmra.mrb[2].mxu0 %vm154_vm3, %v256_v33 }
 0x303   :  { %1398 = vmatpush3.bf16.msra.mxu0 %v1630_v5  ;;  %1309 = vmatprep.mubr.msk.f32.mxu0 %vm1549_vm0, %v1550_v1 }
 0x304   :  { %1399 = vmatprep.subr.bf16.mxu0 %v1548_v0 }
 0x307   :  { %1401 = vmatpush3.bf16.msra.mxu0 %v1645_v10 }
 0x308   :  { %1408 = vmatprep.subr.bf16.mxu0 %v1548_v0 }
 0x3d5   :  { %v325_v34 = vpop.f32.mrb[2].mxu0 }
 0x3d6   :  { %v330_v35 = vrot.slane %v325_v34, 6  ;;  %v1289_v36 = vpop.f32.mrb[3].mxu0 }
 0x3d8   :  { %v332_v37 = vadd.f32 %v330_v35, %v1669_v15 }
 0x3da   :  { %v1187_v38 = vmul.f32 -1.442695, %v332_v37 }
 0x3dc   :  { %1454 = vpow2.f32 %v1187_v38 }
 0x3e6   :  { %v1455_v39 = vpop.eup %1454 }
 0x3e7   :  { %v336_v40 = vadd.f32 1.0, %v1455_v39 }
 0x3e9   :  { %1456 = vrcp.f32 %v336_v40 }
 0x3f3   :  { %v1457_v41 = vpop.eup %1456 }
 0x3f4   :  { %v339_v42 = vmul.f32 2.0, %v1457_v41  ;;  %v344_v47 = vmul.f32 %v1457_v41, %v342_v46 }
 0x3f6   :  { %v1188_v43 = vadd.f32 -1.0, %v339_v42 }
 0x3f8   :  { %346 = vrot.lane.b32.xlu0 %v1188_v43, %s1551_s3 }
 0x46a   :  { %v347_v44 = vpop.permute.xlu0 %346 }
 0x46b   :  { %v349_v45 = vmul.f32 %v1457_v41, %v347_v44 }
 0x46d   :  { %351 = vrot.lane.b32.xlu1 %v349_v45, %s1552_s2 }
 0x4df   :  { %v352_v48 = vpop.permute.xlu1 %351 }
 0x4e0   :  { %v354_v49 = vadd.f32 %v352_v48, %v344_v47 }
 0x4e2   :  { %1458 = vtanh.f32 %v354_v49  ;;  %v450_v6 = vrot.slane %v354_v49, 6 }
 0x4ec   :  { %v1459_v50 = vpop.eup %1458 }
 0x4ed   :  { %357 = vrot.lane.b32.xlu0 %v1459_v50, %s1551_s3 }
 0x55f   :  { %v358_v51 = vpop.permute.xlu0 %357 }
 0x560   :  { %v360_v52 = vmul.f32 %v1457_v41, %v358_v51 }
 0x562   :  { %v362_v53 = vrot.slane %v360_v52, 2 }
 0x564   :  { %363 = vrot.lane.b32.xlu1 %v362_v53, %s1552_s2 }
 0x5d6   :  { %v364_v54 = vpop.permute.xlu1 %363 }
 0x5d7   :  { %1299 = vmatmul.mubr.msk.f32.vlgmr.msra.gmra.mrb[2].mxu1 %vm154_vm3, %v364_v54 }
 0x5d8   :  { %1404 = vmatpush3.bf16.msra.mxu1 %v1630_v5  ;;  %1320 = vmatprep.mubr.msk.f32.mxu1 %vm1549_vm0, %v1550_v1 }
 0x5d9   :  { %1405 = vmatprep.subr.bf16.mxu1 %v1548_v0 }
 0x5dc   :  { %1407 = vmatpush3.bf16.msra.mxu1 %v1645_v10 }
 0x5dd   :  { %1414 = vmatprep.subr.bf16.mxu1 %v1548_v0 }
 0x6aa   :  { %v433_v55 = vpop.f32.mrb[2].mxu1 }
 0x6ab   :  { %v438_v56 = vrot.slane %v433_v55, 4  ;;  %v1300_v57 = vpop.f32.mrb[3].mxu1 }
 0x6ad   :  { %v440_v58 = vadd.f32 %v438_v56, %v1669_v15 }
 0x6af   :  { %v1190_v59 = vmul.f32 -1.442695, %v440_v58 }
 0x6b1   :  { %1460 = vpow2.f32 %v1190_v59 }
 0x6bb   :  { %v1461_v60 = vpop.eup %1460 }
 0x6bc   :  { %v444_v61 = vadd.f32 1.0, %v1461_v60 }
 0x6be   :  { %1462 = vrcp.f32 %v444_v61 }
 0x6c8   :  { %v1463_v62 = vpop.eup %1462 }
 0x6c9   :  { %v447_v63 = vmul.f32 2.0, %v1463_v62  ;;  %v452_v7 = vmul.f32 %v1463_v62, %v450_v6 }
 0x6cb   :  { %v1191_v2 = vadd.f32 -1.0, %v447_v63 }
 0x6cd   :  { %454 = vrot.lane.b32.xlu0 %v1191_v2, %s1551_s3 }
 0x73f   :  { %v455_v3 = vpop.permute.xlu0 %454 }
 0x740   :  { %v457_v4 = vmul.f32 %v1463_v62, %v455_v3 }
 0x742   :  { %459 = vrot.lane.b32.xlu1 %v457_v4, %s1552_s2 }
 0x7b4   :  { %v460_v8 = vpop.permute.xlu1 %459 }
 0x7b5   :  { %v462_v9 = vadd.f32 %v460_v8, %v452_v7 }
 0x7b7   :  { %1464 = vtanh.f32 %v462_v9  ;;  %v558_v30 = vrot.slane %v462_v9, 6 }
 0x7c1   :  { %v1465_v11 = vpop.eup %1464 }
 0x7c2   :  { %465 = vrot.lane.b32.xlu0 %v1465_v11, %s1551_s3 }
 0x834   :  { %v466_v12 = vpop.permute.xlu0 %465 }
 0x835   :  { %v468_v14 = vmul.f32 %v1463_v62, %v466_v12 }
 0x837   :  { %v470_v16 = vrot.slane %v468_v14, 4 }
 0x839   :  { %471 = vrot.lane.b32.xlu1 %v470_v16, %s1552_s2 }
 0x8ab   :  { %v472_v17 = vpop.permute.xlu1 %471 }
 0x8ac   :  { %1310 = vmatmul.mubr.msk.f32.vlgmr.msra.gmra.mrb[4].mxu0 %vm154_vm3, %v472_v17 }
 0x8ad   :  { %1410 = vmatpush3.bf16.msra.mxu0 %v1630_v5  ;;  %1331 = vmatprep.mubr.msk.f32.mxu0 %vm1549_vm0, %v1550_v1 }
 0x8ae   :  { %1411 = vmatprep.subr.bf16.mxu0 %v1548_v0 }
 0x8b1   :  { %1413 = vmatpush3.bf16.msra.mxu0 %v1645_v10 }
 0x8b2   :  { %1420 = vmatprep.subr.bf16.mxu0 %v1548_v0 }
 0x97f   :  { %v541_v18 = vpop.f32.mrb[4].mxu0 }
 0x980   :  { %v546_v19 = vrot.slane %v541_v18, 2  ;;  %v1311_v20 = vpop.f32.mrb[5].mxu0 }
 0x982   :  { %v548_v21 = vadd.f32 %v546_v19, %v1669_v15 }
 0x984   :  { %v1193_v22 = vmul.f32 -1.442695, %v548_v21 }
 0x986   :  { %1466 = vpow2.f32 %v1193_v22 }
 0x990   :  { %v1467_v23 = vpop.eup %1466 }
 0x991   :  { %v552_v24 = vadd.f32 1.0, %v1467_v23 }
 0x993   :  { %1468 = vrcp.f32 %v552_v24 }
 0x99d   :  { %v1469_v25 = vpop.eup %1468 }
 0x99e   :  { %v555_v26 = vmul.f32 2.0, %v1469_v25  ;;  %v560_v31 = vmul.f32 %v1469_v25, %v558_v30 }
 0x9a0   :  { %v1194_v27 = vadd.f32 -1.0, %v555_v26 }
 0x9a2   :  { %562 = vrot.lane.b32.xlu0 %v1194_v27, %s1551_s3 }
 0xa14   :  { %v563_v28 = vpop.permute.xlu0 %562 }
 0xa15   :  { %v565_v29 = vmul.f32 %v1469_v25, %v563_v28 }
 0xa17   :  { %567 = vrot.lane.b32.xlu1 %v565_v29, %s1552_s2 }
 0xa89   :  { %v568_v32 = vpop.permute.xlu1 %567 }
 0xa8a   :  { %v570_v33 = vadd.f32 %v568_v32, %v560_v31 }
 0xa8c   :  { %1470 = vtanh.f32 %v570_v33  ;;  %v663_v49 = vrot.slane %v570_v33, 6 }
 0xa96   :  { %v1471_v15 = vpop.eup %1470 }
 0xa97   :  { %573 = vrot.lane.b32.xlu0 %v1471_v15, %s1551_s3 }
 0xb09   :  { %v574_v34 = vpop.permute.xlu0 %573 }
 0xb0a   :  { %v576_v35 = vmul.f32 %v1469_v25, %v574_v34 }
 0xb0c   :  { %v578_v36 = vrot.slane %v576_v35, 6 }
 0xb0e   :  { %579 = vrot.lane.b32.xlu1 %v578_v36, %s1552_s2 }
 0xb80   :  { %v580_v37 = vpop.permute.xlu1 %579 }
 0xb81   :  { %1321 = vmatmul.mubr.msk.f32.vlgmr.msra.gmra.mrb[4].mxu1 %vm154_vm3, %v580_v37 }
 0xb82   :  { %1416 = vmatpush3.bf16.msra.mxu1 %v1630_v5  ;;  %1342 = vmatprep.mubr.msk.f32.mxu1 %vm1549_vm0, %v1550_v1 }
 0xb83   :  { %1417 = vmatprep.subr.bf16.mxu1 %v1548_v0 }
 0xb86   :  { %1419 = vmatpush3.bf16.msra.mxu1 %v1645_v10 }
 0xb87   :  { %1426 = vmatprep.subr.bf16.mxu1 %v1548_v0 }
 0xc54   :  { %v649_v38 = vpop.f32.mrb[4].mxu1 }
 0xc55   :  { %v653_v39 = vadd.f32 %v649_v38, %v1667_v13  ;;  %v1322_v40 = vpop.f32.mrb[5].mxu1 }
 0xc57   :  { %v1196_v41 = vmul.f32 -1.442695, %v653_v39 }
 0xc59   :  { %1472 = vpow2.f32 %v1196_v41 }
 0xc63   :  { %v1473_v42 = vpop.eup %1472 }
 0xc64   :  { %v657_v43 = vadd.f32 1.0, %v1473_v42 }
 0xc66   :  { %1474 = vrcp.f32 %v657_v43 }
 0xc70   :  { %v1475_v44 = vpop.eup %1474 }
 0xc71   :  { %v660_v45 = vmul.f32 2.0, %v1475_v44  ;;  %v665_v50 = vmul.f32 %v1475_v44, %v663_v49 }
 0xc73   :  { %v1197_v46 = vadd.f32 -1.0, %v660_v45 }
 0xc75   :  { %667 = vrot.lane.b32.xlu0 %v1197_v46, %s1551_s3 }
 0xce7   :  { %v668_v47 = vpop.permute.xlu0 %667 }
 0xce8   :  { %v670_v48 = vmul.f32 %v1475_v44, %v668_v47 }
 0xcea   :  { %672 = vrot.lane.b32.xlu1 %v670_v48, %s1552_s2 }
 0xd5c   :  { %v673_v51 = vpop.permute.xlu1 %672 }
 0xd5d   :  { %v675_v52 = vadd.f32 %v673_v51, %v665_v50  ;;  %v1010_v50 = vld [vmem:[#allocation4 + $0x8] sm:$0xff]  ;;  %v1011_v51 = vld [vmem:[#allocation4 + $0x10] sm:$0xff] }
 0xd5f   :  { %1476 = vtanh.f32 %v675_v52 }
 0xd69   :  { %v1477_v53 = vpop.eup %1476 }
 0xd6a   :  { %678 = vrot.lane.b32.xlu0 %v1477_v53, %s1551_s3  ;;  %v1012_v53 = vld [vmem:[#allocation4 + $0x18] sm:$0xff] }
 0xddc   :  { %v679_v54 = vpop.permute.xlu0 %678 }
 0xddd   :  { %v681_v55 = vmul.f32 %v1475_v44, %v679_v54 }
 0xddf   :  { %683 = vrot.lane.b32.xlu1 %v681_v55, %s1552_s2 }
 0xe51   :  { %v684_v56 = vpop.permute.xlu1 %683 }
 0xe52   :  { %1332 = vmatmul.mubr.msk.f32.vlgmr.msra.gmra.mrb[6].mxu0 %vm154_vm3, %v684_v56 }
 0xe53   :  { %1422 = vmatpush3.bf16.msra.mxu0 %v1630_v5  ;;  %1353 = vmatprep.mubr.msk.f32.mxu0 %vm1549_vm0, %v1550_v1 }
 0xe54   :  { %1423 = vmatprep.subr.bf16.mxu0 %v1548_v0 }
 0xe57   :  { %1425 = vmatpush3.bf16.msra.mxu0 %v1645_v10  ;;  %v770_v10 = vrot.slane %v675_v52, 6 }
 0xe58   :  { %1432 = vmatprep.subr.bf16.mxu0 %v1548_v0 }
 0xf25   :  { %v753_v57 = vpop.f32.mrb[6].mxu0 }
 0xf26   :  { %v758_v58 = vrot.slane %v753_v57, 6  ;;  %v1333_v59 = vpop.f32.mrb[7].mxu0 }
 0xf27   :  { %v1005_v59 = vld [vmem:[#allocation2] sm:$0xff] }
 0xf28   :  { %v760_v60 = vadd.f32 %v758_v58, %v1667_v13 }
 0xf2a   :  { %v1199_v61 = vmul.f32 -1.442695, %v760_v60  ;;  %v1006_v60 = vld [vmem:[#allocation2 + $0x8] sm:$0xff] }
 0xf2c   :  { %1478 = vpow2.f32 %v1199_v61  ;;  %v1007_v61 = vld [vmem:[#allocation2 + $0x10] sm:$0xff] }
 0xf36   :  { %v1479_v62 = vpop.eup %1478 }
 0xf37   :  { %v764_v63 = vadd.f32 1.0, %v1479_v62  ;;  %v1433_v62 = vpack.c.bf16 %v1006_v60, %v1005_v59 }
 0xf39   :  { %1480 = vrcp.f32 %v764_v63  ;;  %v1008_v63 = vld [vmem:[#allocation2 + $0x18] sm:$0xff] }
 0xf43   :  { %v1481_v5 = vpop.eup %1480 }
 0xf44   :  { %v767_v2 = vmul.f32 2.0, %v1481_v5  ;;  %v772_v7 = vmul.f32 %v1481_v5, %v770_v10 }
 0xf46   :  { %v1200_v3 = vadd.f32 -1.0, %v767_v2 }
 0xf48   :  { %774 = vrot.lane.b32.xlu0 %v1200_v3, %s1551_s3 }
 0xfba   :  { %v775_v4 = vpop.permute.xlu0 %774 }
 0xfbb   :  { %v777_v6 = vmul.f32 %v1481_v5, %v775_v4 }
 0xfbd   :  { %779 = vrot.lane.b32.xlu1 %v777_v6, %s1552_s2 }
0x102f   :  { %v780_v8 = vpop.permute.xlu1 %779 }
0x1030   :  { %v782_v9 = vadd.f32 %v780_v8, %v772_v7 }
0x1032   :  { %1482 = vtanh.f32 %v782_v9  ;;  %v878_v30 = vrot.slane %v782_v9, 6 }
0x103c   :  { %v1483_v11 = vpop.eup %1482 }
0x103d   :  { %785 = vrot.lane.b32.xlu0 %v1483_v11, %s1551_s3 }
0x10af   :  { %v786_v12 = vpop.permute.xlu0 %785 }
0x10b0   :  { %v788_v14 = vmul.f32 %v1481_v5, %v786_v12  ;;  %v1436_v5 = vpack.c.bf16 %v1008_v63, %v1007_v61 }
0x10b2   :  { %v790_v16 = vrot.slane %v788_v14, 2 }
0x10b4   :  { %791 = vrot.lane.b32.xlu1 %v790_v16, %s1552_s2 }
0x1126   :  { %v792_v17 = vpop.permute.xlu1 %791 }
0x1127   :  { %1343 = vmatmul.mubr.msk.f32.vlgmr.msra.gmra.mrb[6].mxu1 %vm154_vm3, %v792_v17 }
0x1128   :  { %1364 = vmatprep.mubr.msk.f32.mxu1 %vm1549_vm0, %v1550_v1 }
0x11fa   :  { %v861_v18 = vpop.f32.mrb[6].mxu1 }
0x11fb   :  { %v866_v19 = vrot.slane %v861_v18, 4  ;;  %v1344_v20 = vpop.f32.mrb[7].mxu1 }
0x11fd   :  { %v868_v21 = vadd.f32 %v866_v19, %v1667_v13 }
0x11ff   :  { %v1202_v22 = vmul.f32 -1.442695, %v868_v21 }
0x1201   :  { %1484 = vpow2.f32 %v1202_v22 }
0x120b   :  { %v1485_v23 = vpop.eup %1484 }
0x120c   :  { %v872_v24 = vadd.f32 1.0, %v1485_v23 }
0x120e   :  { %1486 = vrcp.f32 %v872_v24 }
0x1218   :  { %v1487_v25 = vpop.eup %1486 }
0x1219   :  { %v875_v26 = vmul.f32 2.0, %v1487_v25  ;;  %v880_v31 = vmul.f32 %v1487_v25, %v878_v30 }
0x121b   :  { %v1203_v27 = vadd.f32 -1.0, %v875_v26 }
0x121d   :  { %882 = vrot.lane.b32.xlu0 %v1203_v27, %s1551_s3 }
0x128f   :  { %v883_v28 = vpop.permute.xlu0 %882 }
0x1290   :  { %v885_v29 = vmul.f32 %v1487_v25, %v883_v28 }
0x1292   :  { %887 = vrot.lane.b32.xlu1 %v885_v29, %s1552_s2 }
0x1304   :  { %v888_v32 = vpop.permute.xlu1 %887 }
0x1305   :  { %v890_v33 = vadd.f32 %v888_v32, %v880_v31 }
0x1307   :  { %1488 = vtanh.f32 %v890_v33  ;;  %v986_v54 = vrot.slane %v890_v33, 6 }
0x1311   :  { %v1489_v15 = vpop.eup %1488 }
0x1312   :  { %893 = vrot.lane.b32.xlu0 %v1489_v15, %s1551_s3 }
0x1384   :  { %v894_v34 = vpop.permute.xlu0 %893 }
0x1385   :  { %v896_v35 = vmul.f32 %v1487_v25, %v894_v34 }
0x1387   :  { %v898_v36 = vrot.slane %v896_v35, 4 }
0x1389   :  { %899 = vrot.lane.b32.xlu1 %v898_v36, %s1552_s2 }
0x13fb   :  { %v900_v37 = vpop.permute.xlu1 %899 }
0x13fc   :  { %1354 = vmatmul.mubr.msk.f32.vlgmr.msra.gmra.mrb[8].mxu0 %vm154_vm3, %v900_v37 }
0x13fd   :  { %1375 = vmatprep.mubr.msk.f32.mxu0 %vm1549_vm0, %v1550_v1  ;;  %v1009_v1 = vld [vmem:[#allocation4] sm:$0xff]  ;;  %1434 = vmatpush3.bf16.msra.mxu0 %v1433_v62 }
0x13fe   :  { %v1427_v52 = vpack.c.bf16 %v1010_v50, %v1009_v1  ;;  %1435 = vmatprep.subr.bf16.mxu0 %v1548_v0 }
0x1400   :  { %1428 = vmatpush3.bf16.msra.mxu1 %v1427_v52 }
0x1401   :  { %1429 = vmatprep.subr.bf16.mxu1 %v1548_v0  ;;  %1437 = vmatpush3.bf16.msra.mxu0 %v1436_v5  ;;  %v1209_v0 = vld [vmem:[%s1768_s6] ss:$0 sm:$0xff] }
0x14cf   :  { %v969_v38 = vpop.f32.mrb[8].mxu0 }
0x14d0   :  { %v974_v39 = vrot.slane %v969_v38, 2  ;;  %v1355_v40 = vpop.f32.mrb[9].mxu0 }
0x14d2   :  { %v976_v41 = vadd.f32 %v974_v39, %v1667_v13  ;;  %v1430_v13 = vpack.c.bf16 %v1012_v53, %v1011_v51 }
0x14d4   :  { %v1205_v42 = vmul.f32 -1.442695, %v976_v41  ;;  %1431 = vmatpush3.bf16.msra.mxu1 %v1430_v13 }
0x14d6   :  { %1490 = vpow2.f32 %v1205_v42 }
0x14e0   :  { %v1491_v43 = vpop.eup %1490 }
0x14e1   :  { %v980_v44 = vadd.f32 1.0, %v1491_v43 }
0x14e3   :  { %1492 = vrcp.f32 %v980_v44 }
0x14ed   :  { %v1493_v45 = vpop.eup %1492 }
0x14ee   :  { %v983_v46 = vmul.f32 2.0, %v1493_v45  ;;  %v988_v55 = vmul.f32 %v1493_v45, %v986_v54 }
0x14f0   :  { %v1206_v47 = vadd.f32 -1.0, %v983_v46 }
0x14f2   :  { %990 = vrot.lane.b32.xlu0 %v1206_v47, %s1551_s3 }
0x1564   :  { %v991_v48 = vpop.permute.xlu0 %990 }
0x1565   :  { %v993_v49 = vmul.f32 %v1493_v45, %v991_v48 }
0x1567   :  { %995 = vrot.lane.b32.xlu1 %v993_v49, %s1552_s2 }
0x15d9   :  { %v996_v56 = vpop.permute.xlu1 %995 }
0x15da   :  { %v998_v57 = vadd.f32 %v996_v56, %v988_v55 }
0x15dc   :  { %1494 = vtanh.f32 %v998_v57  ;;  %v1014_v58 = vrot.slane %v998_v57, 6 }
0x15de   :  { %1015 = vrot.lane.b32.xlu1 %v1014_v58, %s1553_s16 }
0x15e6   :  { %v1495_v2 = vpop.eup %1494 }
0x15e7   :  { %1001 = vrot.lane.b32.xlu0 %v1495_v2, %s1551_s3 }
0x1650   :  { %v1016_v3 = vpop.permute.xlu1 %1015 }
0x1651   :  { %1365 = vmatmul.mubr.msk.f32.vlgmr.msra.gmra.mrb[8].mxu1 %vm154_vm3, %v1016_v3 }
0x1659   :  { %v1002_v4 = vpop.permute.xlu0 %1001 }
0x165a   :  { %v1004_v6 = vmul.f32 %v1493_v45, %v1002_v4 }
0x165c   :  { %v1090_v10 = vrot.slane %v1004_v6, 6 }
0x165e   :  { %1091 = vrot.lane.b32.xlu0 %v1090_v10, %s1552_s2 }
0x16d0   :  { %v1092_v7 = vpop.permute.xlu0 %1091 }
0x16d1   :  { %1376 = vmatmul.mubr.msk.f32.vlgmr.msra.gmra.mrb[10].mxu0 %vm154_vm3, %v1092_v7 }
0x1724   :  { %v1085_v8 = vpop.f32.mrb[8].mxu1 }
0x1725   :  { %v1366_v9 = vpop.f32.mrb[9].mxu1 }
0x17a4   :  { %v1161_v11 = vpop.f32.mrb[10].mxu0 }
0x17a5   :  { %v1162_v12 = vadd.f32 %v1161_v11, %v1085_v8  ;;  %v1377_v14 = vpop.f32.mrb[11].mxu0 }
0x17a7   :  { %v1172_v16 = vadd.f32 %v1209_v0, %v1162_v12 }
0x17a9   :  { %1173 = vst [vmem:[%s1769_s7] sm:$0x3] %v1172_v16 }
0x17aa   :  { %1178 = vsyncpa [#allocation3], 1 }
0x17ab   :  { %1179 = vsyncpa [#allocation5], 1 }

</bundles_post_ra>
